<compile_context>
chip_gen: v5e
topology: v5e:2x2
jax: 0.10.0
libtpu: 0.0.40
codegen_flags: <defaults>
</compile_context>

<pallas_src>
import functools

import jax
import jax.numpy as jnp
from jax.experimental import pallas as pl
from jax.experimental.pallas import tpu as pltpu

_LANE = 128
_SUBLANE = 8


def _round_up(a, b):
    return ((a + b - 1) // b) * b


def _vmem_block_bytes(rows, cols, itemsize):
    # VMEM blocks are laid out on (8, 128) tiles; account for that padding.
    return _round_up(max(rows, 1), _SUBLANE) * _round_up(max(cols, 1), _LANE) * itemsize


def _vmem_capacity_bytes():
    """Generation-aware VMEM capacity (falls back to the v7x 64 MiB minimum)."""
    try:
        info = pltpu.get_tpu_info()
        cap = getattr(info, "vmem_capacity_bytes", None)
        if cap:
            return int(cap)
    except Exception:
        pass
    return 64 << 20


def _choose_tile_m(M, K, E, lhs_isz, out_isz, vmem_cap):
    """Pick an M tile: as large as VMEM comfortably allows (<= 2048 rows),
    but >= 2 tiles for large M so the v7x parallel axis feeds both TCs."""
    budget = int(0.5 * vmem_cap)
    fixed = 2 * _vmem_block_bytes(K, E, lhs_isz) + 2 * _vmem_block_bytes(1, E, 4)
    per_row = 2 * _round_up(K, _LANE) * lhs_isz + 2 * _round_up(E, _LANE) * out_isz
    rows_cap = max(8, (budget - fixed) // per_row)
    tile_target = int(min(2048, rows_cap))
    n_tiles = max(1, pl.cdiv(M, tile_target))
    if M >= 1024:
        n_tiles = max(n_tiles, 2)  # megacore: keep both v7x TensorCores busy
    if n_tiles == 1:
        return M  # full-extent block: no 8-divisibility requirement
    return _round_up(pl.cdiv(M, n_tiles), _SUBLANE)


def _proj_kernel(x_ref, w_ref, b_ref, o_ref):
    """One (tile_m, K) x (K, E) MXU step; K fits in a single block, so no
    reduction grid axis and no scratch accumulator are needed."""
    o_ref[...] = (
        jnp.dot(x_ref[...], w_ref[...], preferred_element_type=jnp.float32)
        + b_ref[...]
    ).astype(o_ref.dtype)


def _projection_pallas(patches, w_mat, bias, out_dtype):
    """patches: [M, K] (f32 or bf16), w_mat: [K, E], bias: [E] -> [M, E]."""
    M, K = patches.shape
    E = w_mat.shape[1]
    lhs_isz = jnp.dtype(patches.dtype).itemsize
    out_isz = jnp.dtype(out_dtype).itemsize

    vmem_cap = _vmem_capacity_bytes()
    tile_m = _choose_tile_m(M, K, E, lhs_isz, out_isz, vmem_cap)
    grid_m = pl.cdiv(M, tile_m)

    bias2d = bias.reshape(1, E).astype(jnp.float32)

    footprint = (
        2 * _vmem_block_bytes(tile_m, K, lhs_isz)    # patches (double-buffered)
        + 2 * _vmem_block_bytes(K, E, lhs_isz)       # weights (constant index -> resident)
        + 2 * _vmem_block_bytes(1, E, 4)             # bias
        + 2 * _vmem_block_bytes(tile_m, E, out_isz)  # output
    )
    vmem_limit = int(min(int(0.9 * vmem_cap), max(32 << 20, footprint + (8 << 20))))

    cost = pl.CostEstimate(
        flops=2 * M * K * E,
        transcendentals=0,
        bytes_accessed=M * K * lhs_isz + K * E * lhs_isz + E * 4 + M * E * out_isz,
    )

    return pl.pallas_call(
        _proj_kernel,
        out_shape=jax.ShapeDtypeStruct((M, E), out_dtype),
        grid_spec=pltpu.PrefetchScalarGridSpec(
            num_scalar_prefetch=0,
            grid=(grid_m,),
            in_specs=[
                pl.BlockSpec((tile_m, K), lambda i: (i, 0)),
                pl.BlockSpec((K, E), lambda i: (0, 0)),  # constant index -> fetched once
                pl.BlockSpec((1, E), lambda i: (0, 0)),
            ],
            out_specs=pl.BlockSpec((tile_m, E), lambda i: (i, 0)),
        ),
        compiler_params=pltpu.CompilerParams(
            dimension_semantics=("parallel",),
            vmem_limit_bytes=vmem_limit,
        ),
        cost_estimate=cost,
    )(patches, w_mat, bias2d)


def _extract_patches(x, ph, pw, stride):
    """x: [B, H, W, C] -> patches [B*Ho*Wo, ph*pw*C], flattened (kh, kw, c)."""
    B, H, W, C = x.shape
    Ho = (H - ph) // stride + 1
    Wo = (W - pw) // stride + 1
    if stride == ph and ph == pw and H == Ho * ph and W == Wo * pw:
        # Non-overlapping, exactly-tiling patches (the PatchEmbed default):
        # pure reshape + transpose, no gather.
        p = x.reshape(B, Ho, ph, Wo, pw, C)
        p = jnp.transpose(p, (0, 1, 3, 2, 4, 5))  # [B, Ho, Wo, ph, pw, C]
        return p.reshape(B * Ho * Wo, ph * pw * C), Ho, Wo

    # Overlapping / ragged strides: ph*pw shifted strided slices (contiguous
    # DMAs) + concat, instead of an XLA gather-based im2col.
    slabs = []
    for kh in range(ph):
        for kw in range(pw):
            slab = jax.lax.slice(
                x,
                (0, kh, kw, 0),
                (B, kh + (Ho - 1) * stride + 1, kw + (Wo - 1) * stride + 1, C),
                (1, stride, stride, 1),
            )  # [B, Ho, Wo, C]
            slabs.append(slab)
    p = jnp.concatenate(slabs, axis=-1)  # [B, Ho, Wo, ph*pw*C], (kh, kw, c) order
    return p.reshape(B * Ho * Wo, ph * pw * C), Ho, Wo


def patch_embed_forward(x, weight, bias, patch_size, patch_stride, patch_pad,
                        use_bf16=False):
    """x: [B, H, W, C] channels-last. weight: [E, C, ph, pw] (PyTorch layout).
    Returns [B, H', W', E] (norm_layer=None in the module defaults -> no norm)."""
    B, H, W, C = x.shape
    E, Cw, ph, pw = weight.shape
    assert Cw == C
    assert ph == patch_size and pw == patch_size

    if patch_pad:
        x = jnp.pad(
            x, ((0, 0), (patch_pad, patch_pad), (patch_pad, patch_pad), (0, 0))
        )

    patches, Ho, Wo = _extract_patches(x, ph, pw, patch_stride)
    K = ph * pw * C
    # PyTorch conv weight (E, C, ph, pw) -> (ph, pw, C, E) -> (K, E): matches the
    # (kh, kw, c) flattening order produced by _extract_patches.
    w_mat = jnp.transpose(weight, (2, 3, 1, 0)).reshape(K, E)

    out_dtype = x.dtype
    if use_bf16:
        # Halve the dominant HBM read stream; f32 accumulation + f32 bias keep
        # PatchEmbed-level accuracy. XLA fuses the cast into the patch transpose.
        patches = patches.astype(jnp.bfloat16)
        w_mat = w_mat.astype(jnp.bfloat16)

    out = _projection_pallas(patches, w_mat, bias, out_dtype)
    return out.reshape(B, Ho, Wo, E)


if __name__ == "__main__":
    key = jax.random.PRNGKey(0)

    def _reference(x, weight, bias, stride, pad):
        ref = jax.lax.conv_general_dilated(
            jnp.transpose(x, (0, 3, 1, 2)),
            weight,
            window_strides=(stride, stride),
            padding=[(pad, pad), (pad, pad)],
            dimension_numbers=("NCHW", "OIHW", "NCHW"),
            precision=jax.lax.Precision.HIGHEST,
        )
        return jnp.transpose(ref, (0, 2, 3, 1)) + bias

    # --- Case 1: stem PatchEmbed (non-overlapping, default config), f32 ------
    B, H, W = 2, 16, 16
    C, E, ps, st, pd = 4, 32, 4, 4, 0
    k1, k2, k3, key = jax.random.split(key, 4)
    x = jax.random.normal(k1, (B, H, W, C), dtype=jnp.float32)
    w = 0.02 * jax.random.normal(k2, (E, C, ps, ps), dtype=jnp.float32)
    b = 0.01 * jax.random.normal(k3, (E,), dtype=jnp.float32)
    fwd = jax.jit(functools.partial(
        patch_embed_forward, patch_size=ps, patch_stride=st, patch_pad=pd))
    out = jax.block_until_ready(fwd(x, w, b))
    ref = _reference(x, w, b, st, pd)
    assert out.shape == ref.shape == (B, H // st, W // st, E)
    err = float(jnp.max(jnp.abs(out - ref)))
    assert jnp.allclose(out, ref, atol=2e-3, rtol=2e-3), err

    # --- Case 2: EfficientMod downsample PatchEmbed (k=3, s=2, p=1), f32 -----
    C2, E2, ps2, st2, pd2 = 8, 16, 3, 2, 1
    k1, k2, k3, key = jax.random.split(key, 4)
    x2 = jax.random.normal(k1, (B, H, W, C2), dtype=jnp.float32)
    w2 = 0.02 * jax.random.normal(k2, (E2, C2, ps2, ps2), dtype=jnp.float32)
    b2 = 0.01 * jax.random.normal(k3, (E2,), dtype=jnp.float32)
    fwd2 = jax.jit(functools.partial(
        patch_embed_forward, patch_size=ps2, patch_stride=st2, patch_pad=pd2))
    out2 = jax.block_until_ready(fwd2(x2, w2, b2))
    ref2 = _reference(x2, w2, b2, st2, pd2)
    assert out2.shape == ref2.shape == (B, H // st2, W // st2, E2)
    err2 = float(jnp.max(jnp.abs(out2 - ref2)))
    assert jnp.allclose(out2, ref2, atol=2e-3, rtol=2e-3), err2

    # --- Case 3: bf16 input path (flag-gated), looser tolerance --------------
    fwd_bf16 = jax.jit(functools.partial(
        patch_embed_forward, patch_size=ps, patch_stride=st, patch_pad=pd,
        use_bf16=True))
    out3 = jax.block_until_ready(fwd_bf16(x, w, b))
    err3 = float(jnp.max(jnp.abs(out3 - ref)))
    assert jnp.allclose(out3, ref, atol=3e-2, rtol=3e-2), err3

    print("KERNEL_OK")
</pallas_src>

<mosaic_0001>
module attributes {stable_mosaic.version = 11 : i64} {
  func.func @_proj_kernel(%arg0: i32, %arg1: memref<32x64xf32, #tpu.memory_space<vmem>>, %arg2: memref<64x32xf32, #tpu.memory_space<vmem>>, %arg3: memref<1x32xf32, #tpu.memory_space<vmem>>, %arg4: memref<32x32xf32, #tpu.memory_space<vmem>>) attributes {dimension_semantics = [#tpu.dimension_semantics<parallel>], iteration_bounds = array<i64: 1>, scalar_prefetch = 0 : i64, scratch_operands = 0 : i64, tpu.core_type = #tpu.core_type<tc>, window_params = [{transform_indices = @transform_0, window_bounds = array<i64: 32, 64>}, {pipeline_mode = #tpu.pipeline_mode<synchronous>, transform_indices = @transform_1, window_bounds = array<i64: 64, 32>}, {pipeline_mode = #tpu.pipeline_mode<synchronous>, transform_indices = @transform_2, window_bounds = array<i64: 1, 32>}, {transform_indices = @transform_3, window_bounds = array<i64: 32, 32>}]} {
    %c0 = arith.constant 0 : index
    %c0_0 = arith.constant 0 : index
    %0 = vector.load %arg1[%c0, %c0_0] : memref<32x64xf32, #tpu.memory_space<vmem>>, vector<32x64xf32>
    %c0_1 = arith.constant 0 : index
    %c0_2 = arith.constant 0 : index
    %1 = vector.load %arg2[%c0_1, %c0_2] : memref<64x32xf32, #tpu.memory_space<vmem>>, vector<64x32xf32>
    %cst = arith.constant dense<0.000000e+00> : vector<32x32xf32>
    %2 = tpu.matmul %0, %1, %cst {dimension_numbers = #tpu.dot_dimension_numbers<[1], [0], [0], [1], [0, 0, 1, 1], [], []>} : vector<32x64xf32>, vector<64x32xf32>, vector<32x32xf32> -> vector<32x32xf32>
    %c0_3 = arith.constant 0 : index
    %c0_4 = arith.constant 0 : index
    %3 = vector.load %arg3[%c0_3, %c0_4] : memref<1x32xf32, #tpu.memory_space<vmem>>, vector<1x32xf32>
    %4 = vector.broadcast %3 : vector<1x32xf32> to vector<32x32xf32>
    %5 = arith.addf %2, %4 : vector<32x32xf32>
    %c0_5 = arith.constant 0 : index
    %c0_6 = arith.constant 0 : index
    %6 = vector.load %arg4[%c0_5, %c0_6] : memref<32x32xf32, #tpu.memory_space<vmem>>, vector<32x32xf32>
    tpu.vector_store %arg4[%c0_5, %c0_6], %5 {strides = array<i32>} : memref<32x32xf32, #tpu.memory_space<vmem>>, vector<32x32xf32>,
    return
  }
  func.func @transform_0(%arg0: i32) -> (i32, i32) {
    %c0_i32 = arith.constant 0 : i32
    %c0_i32_0 = arith.constant 0 : i32
    return %arg0, %c0_i32 : i32, i32
  }
  func.func @transform_1(%arg0: i32) -> (i32, i32) {
    %c0_i32 = arith.constant 0 : i32
    %c0_i32_0 = arith.constant 0 : i32
    %c0_i32_1 = arith.constant 0 : i32
    return %c0_i32, %c0_i32_0 : i32, i32
  }
  func.func @transform_2(%arg0: i32) -> (i32, i32) {
    %c0_i32 = arith.constant 0 : i32
    %c0_i32_0 = arith.constant 0 : i32
    %c0_i32_1 = arith.constant 0 : i32
    return %c0_i32, %c0_i32_0 : i32, i32
  }
  func.func @transform_3(%arg0: i32) -> (i32, i32) {
    %c0_i32 = arith.constant 0 : i32
    %c0_i32_0 = arith.constant 0 : i32
    return %arg0, %c0_i32 : i32, i32
  }
}

</mosaic_0001>

<bundles_post_ra>
// kernel: patch_embed_forward.1
= control target key start
LH: loop header
LB: loop body
LE: loop exit
PB: predicated region body
PF: predicated region fallthrough
CT: control target
= control target key end

     0   :  { %s223_s0 = inlined_call_operand.vmem [shape: f32[32,64], index: 0, kind: input, shape index: {}]   ;;  %s224_s1 = inlined_call_operand.vmem [shape: f32[64,32], index: 1, kind: input, shape index: {}]   ;;  %s225_s2 = inlined_call_operand.vmem [shape: f32[1,32], index: 2, kind: input, shape index: {}]   ;;  %s226_s3 = inlined_call_operand.hbm [shape: f32[32,32], index: 3, kind: output, shape index: {}]  }
   0x1   :  { %v26_v0 = vld [vmem:[%s224_s1 + $0x38] sm:$0xff]  ;;  %v25_v1 = vld [vmem:[%s224_s1 + $0x30] sm:$0xff]  ;;  %v24_v2 = vld [vmem:[%s224_s1 + $0x28] sm:$0xff] }
   0x2   :  { %101 = vmatpush.msra.mxu2 %v26_v0  ;;  %102 = vmatpush.msra.mxu3 %v26_v0  ;;  %v23_v3 = vld [vmem:[%s224_s1 + $0x20] sm:$0xff] }
   0x3   :  { %52 = vmatpush.msra.mxu0 %v26_v0  ;;  %100 = vmatpush.msra.mxu1 %v26_v0 }
   0x4   :  { %104 = vmatpush.msra.mxu2 %v25_v1  ;;  %105 = vmatpush.msra.mxu3 %v25_v1 }
   0x5   :  { %53 = vmatpush.msra.mxu0 %v25_v1  ;;  %103 = vmatpush.msra.mxu1 %v25_v1 }
   0x6   :  { %8 = vsyncpa [#allocation3], 0  ;;  %107 = vmatpush.msra.mxu2 %v24_v2  ;;  %108 = vmatpush.msra.mxu3 %v24_v2  ;;  %v22_v4 = vld [vmem:[%s224_s1 + $0x18] sm:$0xff]  ;;  %v21_v5 = vld [vmem:[%s224_s1 + $0x10] sm:$0xff]  ;;  %vm31_vm0 = vcmask 523264   ;;  %vm73_vm1 = vcmask 261120  }
   0x7   :  { %54 = vmatpush.msra.mxu0 %v24_v2  ;;  %106 = vmatpush.msra.mxu1 %v24_v2  ;;  %v20_v6 = vld [vmem:[%s224_s1 + $0x8] sm:$0xff]  ;;  %v19_v7 = vld [vmem:[%s224_s1] sm:$0xff]  ;;  %v17_v8 = vld [vmem:[%s223_s0 + $0x10] sm:$0xff]  ;;  %s154_s10 = smov [#allocation2]   ;;  %s156_s14 = smov 8  }
   0x8   :  { %110 = vmatpush.msra.mxu2 %v23_v3  ;;  %111 = vmatpush.msra.mxu3 %v23_v3  ;;  %v18_v9 = vld [vmem:[%s223_s0 + $0x18] sm:$0xff]  ;;  %v15_v10 = vld [vmem:[%s223_s0] sm:$0xff]  ;;  %v16_v11 = vld [vmem:[%s223_s0 + $0x8] sm:$0xff]  ;;  %s82_s11 = sshll.u32 %s154_s10, 4  ;;  %s84_s0 = sshll.u32 %s226_s3, 4  ;;  %s83_s11 = int_to_ptr.vmem [resolvable:$true] %s82_s11  ;;  %s85_s0 = int_to_ptr.hbm [resolvable:$true] %s84_s0 }
   0x9   :  { %55 = vmatpush.msra.mxu0 %v23_v3  ;;  %109 = vmatpush.msra.mxu1 %v23_v3  ;;  %v127_v12 = vld [vmem:[%s225_s2] ss:$0 sm:$0xff]  ;;  %s155_s2 = smov 128  }
   0xa   :  { %113 = vmatpush.msra.mxu2 %v22_v4  ;;  %114 = vmatpush.msra.mxu3 %v22_v4 }
   0xb   :  { %56 = vmatpush.msra.mxu0 %v22_v4  ;;  %112 = vmatpush.msra.mxu1 %v22_v4 }
   0xc   :  { %116 = vmatpush.msra.mxu2 %v21_v5  ;;  %117 = vmatpush.msra.mxu3 %v21_v5 }
   0xd   :  { %57 = vmatpush.msra.mxu0 %v21_v5  ;;  %115 = vmatpush.msra.mxu1 %v21_v5 }
   0xe   :  { %119 = vmatpush.msra.mxu2 %v20_v6  ;;  %120 = vmatpush.msra.mxu3 %v20_v6 }
   0xf   :  { %58 = vmatpush.msra.mxu0 %v20_v6  ;;  %118 = vmatpush.msra.mxu1 %v20_v6 }
  0x10   :  { %122 = vmatpush.msra.mxu2 %v19_v7  ;;  %123 = vmatpush.msra.mxu3 %v19_v7 }
  0x11   :  { %98 = vmatmul.msk.f32.vlgmr.msra.gmra.mxu2 %vm31_vm0, %v17_v8  ;;  %99 = vmatmul.msk.f32.vlgmr.msra.gmra.mxu3 %vm31_vm0, %v18_v9 }
  0x12   :  { %59 = vmatpush.msra.mxu0 %v19_v7  ;;  %121 = vmatpush.msra.mxu1 %v19_v7 }
  0x13   :  { %96 = vmatmul.msk.f32.vlgmr.msra.gmra.mxu0 %vm31_vm0, %v15_v10  ;;  %97 = vmatmul.msk.f32.vlgmr.msra.gmra.mxu1 %vm31_vm0, %v16_v11 }
  0x90   :  { %v61_v13 = vpop.f32.mrf.mxu0  ;;  %v64_v14 = vpop.f32.mrf.mxu1 }
  0x91   :  { %v62_v15 = vadd.f32 %v127_v12, %v61_v13  ;;  %v65_v16 = vadd.f32 %v127_v12, %v64_v14 }
  0x93   :  { %74 = vst.msk [vmem:[#allocation2] sm:$0xff] %vm73_vm1, %v62_v15 }
  0x94   :  { %75 = vst.msk [vmem:[#allocation2 + $0x8] sm:$0xff] %vm73_vm1, %v65_v16  ;;  %v67_v17 = vpop.f32.mrf.mxu2  ;;  %v70_v18 = vpop.f32.mrf.mxu3 }
  0x95   :  { %v68_v19 = vadd.f32 %v127_v12, %v67_v17  ;;  %v71_v20 = vadd.f32 %v127_v12, %v70_v18 }
  0x97   :  { %76 = vst.msk [vmem:[#allocation2 + $0x10] sm:$0xff] %vm73_vm1, %v68_v19 }
  0x98   :  { %77 = vst.msk [vmem:[#allocation2 + $0x18] sm:$0xff] %vm73_vm1, %v71_v20 }
  0x99   :  { %90 = dma.vmem_to_hbm [thread:$0]  %s83_s11, 512, %s85_s0, [#allocation3], %s155_s2, %s155_s2, %s156_s14  }
  0x9a   :  { %152 = dma.done.wait [#allocation3], 512  }
  0x9b   :  { %153 = vsyncadd [#allocation3], 4294966784 }
  0x9c   :  { %95 = vsyncpa [#allocation3], 1 }

</bundles_post_ra>
